<compile_context>
chip_gen: v7x
topology: tpu7x:2x2x1
jax: 0.10.0
libtpu: 0.0.40
codegen_flags: <defaults>
</compile_context>

<pallas_src>
import jax
import jax.numpy as jnp
from jax.experimental import pallas as pl
from jax.experimental.pallas import tpu as pltpu


def _make_kernel(tb: int, seq: int):
    def kernel(x_ref, w_ref, b_ref, o_ref):
        # x_ref: (tb*seq, D_in) -- tb batch elements, flattened over seq.
        # w_ref: (D_in, D_out), b_ref: (1, D_out), o_ref: (tb, D_out).
        y = jnp.dot(x_ref[...], w_ref[...],
                    preferred_element_type=jnp.float32)      # (tb*seq, D_out) on MXU
        y = y.reshape(tb, seq, y.shape[-1])                   # split batch/seq (seq mult of 8 -> no-op)
        m = jnp.max(y, axis=1)                                # (tb, D_out) seq-max first
        m = jnp.maximum(m + b_ref[...], 0.0)                  # bias + ReLU on reduced rows only
        o_ref[...] = m.astype(o_ref.dtype)
    return kernel


def sentence_maxpool(x, w, b, *, block_rows: int = 256):
    """x: (B, S, D_in), w: (D_in, D_out), b: (D_out,) -> (B, D_out)."""
    B, S, D_in = x.shape
    D_out = w.shape[1]

    # Pick TB (batch elements per grid step) aiming for ~block_rows matmul rows.
    tb_raw = max(1, block_rows // S)
    if tb_raw >= B:
        tb = B                              # single grid step: block == full array (always legal)
    else:
        tb = 8 * max(1, tb_raw // 8)        # tiled batch: keep the (TB, D_out) output block sublane-aligned
    b_pad = pl.cdiv(B, tb) * tb
    if b_pad != B:
        # Zero-padded batch elements produce extra output rows that are sliced off.
        x = jnp.pad(x, ((0, b_pad - B), (0, 0), (0, 0)))

    xf = x.reshape(b_pad * S, D_in)          # flatten (batch, seq) -> matmul M axis
    b2 = b.reshape(1, D_out)

    out = pl.pallas_call(
        _make_kernel(tb, S),
        out_shape=jax.ShapeDtypeStruct((b_pad, D_out), x.dtype),
        grid_spec=pltpu.PrefetchScalarGridSpec(
            num_scalar_prefetch=0,
            grid=(b_pad // tb,),
            in_specs=[
                pl.BlockSpec((tb * S, D_in), lambda i: (i, 0)),
                pl.BlockSpec((D_in, D_out), lambda i: (0, 0)),
                pl.BlockSpec((1, D_out), lambda i: (0, 0)),
            ],
            out_specs=pl.BlockSpec((tb, D_out), lambda i: (i, 0)),
        ),
        compiler_params=pltpu.CompilerParams(
            dimension_semantics=("parallel",)),
    )(xf, w, b2)
    return out[:B]


def _reference(x, w, b):
    return jnp.max(jax.nn.relu(jnp.einsum("bsd,do->bso", x, w) + b), axis=1)


if __name__ == "__main__":
    key = jax.random.PRNGKey(0)

    # Small shapes consistent with the module's forward: (B, S, word_dim).
    B, S, D_in, D_out = 4, 8, 32, 64
    kx, kw, kb, kx2 = jax.random.split(key, 4)

    x = jax.random.normal(kx, (B, S, D_in), dtype=jnp.float32)
    bound = 1.0 / jnp.sqrt(jnp.float32(D_in))
    w = jax.random.uniform(kw, (D_in, D_out), jnp.float32, -bound, bound)
    b = jax.random.uniform(kb, (D_out,), jnp.float32, -bound, bound)

    out = jax.block_until_ready(sentence_maxpool(x, w, b))
    ref = _reference(x, w, b)
    assert out.shape == (B, D_out)
    assert jnp.allclose(out, ref, atol=1e-5, rtol=1e-5)

    # Second check: batch tiling path with multiple grid steps + batch padding.
    B2 = 12
    x2 = jax.random.normal(kx2, (B2, S, D_in), dtype=jnp.float32)
    out2 = jax.block_until_ready(sentence_maxpool(x2, w, b, block_rows=32))
    ref2 = _reference(x2, w, b)
    assert out2.shape == (B2, D_out)
    assert jnp.allclose(out2, ref2, atol=1e-5, rtol=1e-5)

    print("KERNEL_OK")
</pallas_src>

<mosaic_0001>
module attributes {stable_mosaic.version = 11 : i64} {
  func.func @kernel(%arg0: i32, %arg1: memref<32x32xf32, #tpu.memory_space<vmem>>, %arg2: memref<32x64xf32, #tpu.memory_space<vmem>>, %arg3: memref<1x64xf32, #tpu.memory_space<vmem>>, %arg4: memref<4x64xf32, #tpu.memory_space<vmem>>) attributes {dimension_semantics = [#tpu.dimension_semantics<parallel>], iteration_bounds = array<i64: 1>, scalar_prefetch = 0 : i64, scratch_operands = 0 : i64, tpu.core_type = #tpu.core_type<tc>, window_params = [{transform_indices = @transform_0, window_bounds = array<i64: 32, 32>}, {pipeline_mode = #tpu.pipeline_mode<synchronous>, transform_indices = @transform_1, window_bounds = array<i64: 32, 64>}, {pipeline_mode = #tpu.pipeline_mode<synchronous>, transform_indices = @transform_2, window_bounds = array<i64: 1, 64>}, {transform_indices = @transform_3, window_bounds = array<i64: 4, 64>}]} {
    %c0 = arith.constant 0 : index
    %c0_0 = arith.constant 0 : index
    %0 = vector.load %arg1[%c0, %c0_0] : memref<32x32xf32, #tpu.memory_space<vmem>>, vector<32x32xf32>
    %c0_1 = arith.constant 0 : index
    %c0_2 = arith.constant 0 : index
    %1 = vector.load %arg2[%c0_1, %c0_2] : memref<32x64xf32, #tpu.memory_space<vmem>>, vector<32x64xf32>
    %cst = arith.constant dense<0.000000e+00> : vector<32x64xf32>
    %2 = tpu.matmul %0, %1, %cst {dimension_numbers = #tpu.dot_dimension_numbers<[1], [0], [0], [1], [0, 0, 1, 1], [], []>} : vector<32x32xf32>, vector<32x64xf32>, vector<32x64xf32> -> vector<32x64xf32>
    %3 = vector.shape_cast %2 : vector<32x64xf32> to vector<4x8x64xf32>
    %cst_3 = arith.constant dense<0xFF800000> : vector<4x64xf32>
    %4 = vector.multi_reduction <maximumf>, %3, %cst_3 [1] : vector<4x8x64xf32> to vector<4x64xf32>
    %c0_4 = arith.constant 0 : index
    %c0_5 = arith.constant 0 : index
    %5 = vector.load %arg3[%c0_4, %c0_5] : memref<1x64xf32, #tpu.memory_space<vmem>>, vector<1x64xf32>
    %6 = vector.broadcast %5 : vector<1x64xf32> to vector<4x64xf32>
    %7 = arith.addf %4, %6 : vector<4x64xf32>
    %cst_6 = arith.constant 0.000000e+00 : f32
    %8 = vector.broadcast %cst_6 : f32 to vector<4x64xf32>
    %9 = arith.maximumf %7, %8 : vector<4x64xf32>
    %c0_7 = arith.constant 0 : index
    %c0_8 = arith.constant 0 : index
    %10 = vector.load %arg4[%c0_7, %c0_8] : memref<4x64xf32, #tpu.memory_space<vmem>>, vector<4x64xf32>
    tpu.vector_store %arg4[%c0_7, %c0_8], %9 {strides = array<i32>} : memref<4x64xf32, #tpu.memory_space<vmem>>, vector<4x64xf32>,
    return
  }
  func.func @transform_0(%arg0: i32) -> (i32, i32) {
    %c0_i32 = arith.constant 0 : i32
    %c0_i32_0 = arith.constant 0 : i32
    return %arg0, %c0_i32 : i32, i32
  }
  func.func @transform_1(%arg0: i32) -> (i32, i32) {
    %c0_i32 = arith.constant 0 : i32
    %c0_i32_0 = arith.constant 0 : i32
    %c0_i32_1 = arith.constant 0 : i32
    return %c0_i32, %c0_i32_0 : i32, i32
  }
  func.func @transform_2(%arg0: i32) -> (i32, i32) {
    %c0_i32 = arith.constant 0 : i32
    %c0_i32_0 = arith.constant 0 : i32
    %c0_i32_1 = arith.constant 0 : i32
    return %c0_i32, %c0_i32_0 : i32, i32
  }
  func.func @transform_3(%arg0: i32) -> (i32, i32) {
    %c0_i32 = arith.constant 0 : i32
    %c0_i32_0 = arith.constant 0 : i32
    return %arg0, %c0_i32 : i32, i32
  }
}

</mosaic_0001>

<bundles_post_ra>
// kernel: tpu_custom_call.1
= control target key start
LH: loop header
LB: loop body
LE: loop exit
PB: predicated region body
PF: predicated region fallthrough
CT: control target
= control target key end

     0   :  { %8 = vsyncpa [#allocation3], 0  ;;  %s409_s0 = inlined_call_operand.hbm [shape: f32[32,32], index: 0, kind: input, shape index: {}]   ;;  %s410_s1 = inlined_call_operand.hbm [shape: f32[32,64], index: 1, kind: input, shape index: {}]   ;;  %s411_s2 = inlined_call_operand.vmem [shape: f32[1,64], index: 2, kind: input, shape index: {}]   ;;  %s412_s3 = inlined_call_operand.hbm [shape: f32[4,64], index: 3, kind: output, shape index: {}]  }
   0x1   :  { %9 = vsyncpa [#allocation6], 0 }
   0x2   :  { %10 = vsyncpa [#allocation4], 0  ;;  %s341_s12 = smov [#allocation2]   ;;  %s269_s16 = scalar_lea.hbm %s409_s0, 512 }
   0x3   :  { %s16_s13 = sshll.u32 %s341_s12, 4  ;;  %p270_p0 = scmp.ne.s32.totalorder %s409_s0, %s269_s16  ;;  %s17_s13 = int_to_ptr.vmem [resolvable:$true] %s16_s13 }
   0x4   :  { %p273_p1 = scmp.lt.u32.totalorder %s269_s16, %s409_s0 }
   0x6   :  { %p275_p2 = pnand %p273_p1, %p270_p0 }
   0x8   :  { %278 = shalt.err (!%p275_p2)
}
   0x9   :  { %s279_s21 = scalar_lea.vmem %s17_s13, 512  ;;  %p284_p4 = scmp.lt.s32.totalorder %s17_s13, %s17_s13 }
   0xa   :  { %p280_p3 = scmp.ne.s32.totalorder %s17_s13, %s279_s21  ;;  %p285_p5 = scmp.lt.s32.totalorder %s279_s21, %s279_s21 }
   0xc   :  { %p286_p6 = por %p285_p5, %p284_p4 }
   0xe   :  { %p287_p7 = pnand %p286_p6, %p280_p3 }
  0x10   :  { %290 = shalt.err (!%p287_p7)
}
  0x11   :  { %s342_s22 = smov 128   ;;  %s343_s23 = smov 8  }
  0x12   :  { %22 = dma.hbm_to_vmem [thread:$0]  %s409_s0, 512, %s17_s13, [#allocation3], %s342_s22, %s342_s22, %s343_s23  }
  0x13   :  { %s344_s26 = smov [#allocation5]   ;;  %s291_s30 = scalar_lea.hbm %s410_s1, 512 }
  0x14   :  { %s28_s27 = sshll.u32 %s344_s26, 4  ;;  %p292_p8 = scmp.ne.s32.totalorder %s410_s1, %s291_s30  ;;  %s29_s27 = int_to_ptr.vmem [resolvable:$true] %s28_s27 }
  0x15   :  { %p295_p9 = scmp.lt.u32.totalorder %s291_s30, %s410_s1 }
  0x17   :  { %p297_p10 = pnand %p295_p9, %p292_p8 }
  0x19   :  { %300 = shalt.err (!%p297_p10)
}
  0x1a   :  { %s301_s8 = scalar_lea.vmem %s29_s27, 512  ;;  %p306_p12 = scmp.lt.s32.totalorder %s29_s27, %s29_s27 }
  0x1b   :  { %p302_p11 = scmp.ne.s32.totalorder %s29_s27, %s301_s8  ;;  %p307_p13 = scmp.lt.s32.totalorder %s301_s8, %s301_s8 }
  0x1d   :  { %p308_p0 = por %p307_p13, %p306_p12 }
  0x1f   :  { %p309_p1 = pnand %p308_p0, %p302_p11 }
  0x21   :  { %312 = shalt.err (!%p309_p1)
}
  0x22   :  { %34 = dma.hbm_to_vmem [thread:$0]  %s410_s1, 512, %s29_s27, [#allocation6], %s342_s22, %s342_s22, %s343_s23  }
  0x23   :  { %335 = dma.done.wait [#allocation3], 512  }
  0x24   :  { %336 = vsyncadd [#allocation3], 4294966784 }
  0x25   :  { %337 = dma.done.wait [#allocation6], 512  }
  0x26   :  { %338 = vsyncadd [#allocation6], 4294966784  ;;  %vm51_vm0 = vcmask 261120   ;;  %v47_v0 = vld [vmem:[#allocation5] sm:$0xff]  ;;  %v48_v1 = vld [vmem:[#allocation5 + $0x8] sm:$0xff]  ;;  %vm149_vm1 = vcmask 523264  }
  0x27   :  { %v49_v2 = vld [vmem:[#allocation5 + $0x10] sm:$0xff]  ;;  %v252_v3 = vpack.c.bf16 %v48_v1, %v47_v0  ;;  %v50_v4 = vld [vmem:[#allocation5 + $0x18] sm:$0xff]  ;;  %v43_v5 = vld [vmem:[#allocation2] sm:$0xff]  ;;  %vm198_vm2 = vcmask 1041409   ;;  %vm201_vm3 = vcmask 1042434   ;;  %s345_s11 = smov [#allocation7]  }
  0x28   :  { %v45_v6 = vld [vmem:[#allocation2 + $0x10] sm:$0xff]  ;;  %v256_v7 = vpack.c.bf16 %v50_v4, %v49_v2  ;;  %246 = vmatprep.mubr.msk.f32.mxu0 %vm51_vm0, %v43_v5  ;;  %v44_v8 = vld [vmem:[#allocation2 + $0x8] sm:$0xff]  ;;  %v46_v9 = vld [vmem:[#allocation2 + $0x18] sm:$0xff]  ;;  %s215_s12 = sshll.u32 %s345_s11, 4  ;;  %vm204_vm4 = vcmask 1043459   ;;  %vm207_vm5 = vcmask 519168   ;;  %s216_s12 = int_to_ptr.vmem [resolvable:$true] %s215_s12 }
  0x29   :  { %249 = vmatprep.mubr.msk.f32.mxu1 %vm51_vm0, %v45_v6  ;;  %253 = vmatprep.subr.bf16.mxu0 %v252_v3  ;;  %v229_v36 = vld [vmem:[%s411_s2] ss:$0 sm:$0xff]  ;;  %s313_s2 = scalar_lea.vmem %s216_s12, 64  ;;  %p318_p3 = scmp.lt.s32.totalorder %s216_s12, %s216_s12 }
  0x2a   :  { %260 = vmatprep.subr.bf16.mxu1 %v252_v3  ;;  %255 = vmatpush3.bf16.msra.mxu0 %v252_v3  ;;  %p314_p2 = scmp.ne.s32.totalorder %s216_s12, %s313_s2  ;;  %p319_p4 = scmp.lt.s32.totalorder %s313_s2, %s313_s2 }
  0x2b   :  { %262 = vmatpush3.bf16.msra.mxu1 %v252_v3  ;;  %257 = vmatprep.subr.bf16.mxu0 %v256_v7 }
  0x2c   :  { %261 = vmatprep.subr.bf16.mxu1 %v256_v7  ;;  %p320_p5 = por %p319_p4, %p318_p3 }
  0x2e   :  { %259 = vmatpush3.bf16.msra.mxu0 %v256_v7  ;;  %p321_p6 = pnand %p320_p5, %p314_p2 }
  0x2f   :  { %263 = vmatpush3.bf16.msra.mxu1 %v256_v7 }
  0x31   :  { %247 = vmatmul.mubr.msk.f32.vlgmr.msra.gmra.mrb[0].mxu0 %vm51_vm0, %v44_v8 }
  0x32   :  { %250 = vmatmul.mubr.msk.f32.vlgmr.msra.gmra.mrb[0].mxu1 %vm51_vm0, %v46_v9 }
 0x104   :  { %v248_v10 = vpop.f32.mrb[0].mxu0 }
 0x105   :  { %v251_v11 = vpop.f32.mrb[0].mxu1  ;;  %v157_v12 = vsel %vm149_vm1, %v248_v10, -inf  ;;  %v130_v14 = vpop.f32.mrb[1].mxu0 }
 0x106   :  { %v171_v13 = vsel %vm149_vm1, %v251_v11, -inf  ;;  %v140_v15 = vpop.f32.mrb[1].mxu1  ;;  %v158_v16 = vrot.slane %v157_v12, 4  ;;  %v150_v18 = vsel %vm149_vm1, %v130_v14, -inf }
 0x107   :  { %v172_v17 = vrot.slane %v171_v13, 4  ;;  %v164_v19 = vsel %vm149_vm1, %v140_v15, -inf  ;;  %v151_v20 = vrot.slane %v150_v18, 4 }
 0x108   :  { %v165_v21 = vrot.slane %v164_v19, 4  ;;  %v159_v22 = vmax.f32 %v157_v12, %v158_v16 }
 0x109   :  { %v173_v23 = vmax.f32 %v171_v13, %v172_v17  ;;  %v152_v24 = vmax.f32 %v150_v18, %v151_v20 }
 0x10a   :  { %v166_v25 = vmax.f32 %v164_v19, %v165_v21  ;;  %v160_v26 = vrot.slane %v159_v22, 2 }
 0x10b   :  { %v174_v27 = vrot.slane %v173_v23, 2  ;;  %v153_v28 = vrot.slane %v152_v24, 2 }
 0x10c   :  { %v167_v29 = vrot.slane %v166_v25, 2  ;;  %v161_v30 = vmax.f32 %v159_v22, %v160_v26 }
 0x10d   :  { %v175_v31 = vmax.f32 %v173_v23, %v174_v27  ;;  %v154_v32 = vmax.f32 %v152_v24, %v153_v28 }
 0x10e   :  { %v168_v33 = vmax.f32 %v166_v25, %v167_v29  ;;  %v162_v34 = vrot.slane %v161_v30, 1 }
 0x10f   :  { %v176_v35 = vrot.slane %v175_v31, 1  ;;  %v155_v37 = vrot.slane %v154_v32, 1 }
 0x110   :  { %v169_v38 = vrot.slane %v168_v33, 1  ;;  %v163_v39 = vmax.f32 %v161_v30, %v162_v34 }
 0x111   :  { %v177_v40 = vmax.f32 %v175_v31, %v176_v35  ;;  %v156_v41 = vmax.f32 %v154_v32, %v155_v37 }
 0x112   :  { %v170_v42 = vmax.f32 %v168_v33, %v169_v38  ;;  %v186_v43 = vadd.f32 %v229_v36, %v163_v39 }
 0x113   :  { %v188_v44 = vadd.f32 %v229_v36, %v177_v40  ;;  %v185_v45 = vadd.f32 %v229_v36, %v156_v41 }
 0x114   :  { %v187_v46 = vadd.f32 %v229_v36, %v170_v42  ;;  %v190_v47 = vmax.f32 %v186_v43, 0.0 }
 0x115   :  { %v192_v48 = vmax.f32 %v188_v44, 0.0  ;;  %v189_v49 = vmax.f32 %v185_v45, 0.0 }
 0x116   :  { %v191_v50 = vmax.f32 %v187_v46, 0.0  ;;  %v197_v51 = vrot.slane %v190_v47, 7 }
 0x117   :  { %v203_v54 = vrot.slane %v192_v48, 5 }
 0x118   :  { %v200_v52 = vrot.slane %v191_v50, 6  ;;  %v199_v53 = vsel %vm198_vm2, %v197_v51, %v189_v49 }
 0x11a   :  { %v202_v55 = vsel %vm201_vm3, %v200_v52, %v199_v53 }
 0x11b   :  { %v205_v56 = vsel %vm204_vm4, %v203_v54, %v202_v55 }
 0x11c   :  { %208 = vst.msk [vmem:[#allocation7] sm:$0xf] %vm207_vm5, %v205_v56 }
 0x11d   :  { %324 = shalt.err (!%p321_p6)
}
 0x11e   :  { %s325_s15 = scalar_lea.hbm %s412_s3, 64 }
 0x11f   :  { %p326_p7 = scmp.ne.s32.totalorder %s412_s3, %s325_s15  ;;  %p329_p8 = scmp.lt.u32.totalorder %s325_s15, %s412_s3 }
 0x121   :  { %p331_p9 = pnand %p329_p8, %p326_p7 }
 0x123   :  { %334 = shalt.err (!%p331_p9)
}
 0x124   :  { %218 = dma.vmem_to_hbm [thread:$0]  %s216_s12, 64, %s412_s3, [#allocation4]  }
 0x125   :  { %339 = dma.done.wait [#allocation4], 64  }
 0x126   :  { %340 = vsyncadd [#allocation4], 4294967232 }
 0x127   :  { %222 = vsyncpa [#allocation3], 1 }
 0x128   :  { %223 = vsyncpa [#allocation6], 1 }
 0x129   :  { %224 = vsyncpa [#allocation4], 1 }

</bundles_post_ra>
